<compile_context>
chip_gen: v7x
topology: tpu7x:2x2x1
jax: 0.10.0
libtpu: 0.0.40
codegen_flags: <defaults>
</compile_context>

<pallas_src>
import numpy as np
import jax
import jax.numpy as jnp
from jax.experimental import pallas as pl
from jax.experimental.pallas import tpu as pltpu

LANES = 128
AUG = 8            # augmented coordinate width: [x, y, z, 1, 0, 0, 0, 0]

# Weight-slab row layout (every block starts on an 8-row boundary -> tile-aligned slices).
ROW_WV1 = 0                      # rows 0..7   : fused Wv@Wo@W1 (+ valid-row bias in row 3)
ROW_B1N = 8                      # row  8      : noise-row pre-activation  bo@W1 + b1
ROW_B2 = 16                      # row  16     : final bias b2
ROW_W2 = 24                      # rows 24..151: W2 zero-padded to (128, 128)
SLAB_ROWS = ROW_W2 + LANES       # 152


# ----------------------------------------------------------------------------
# Host-side deterministic DBSCAN (stand-in for the external `parallel_dbscan`).
# TODO(synk): `parallel_dbscan` is an external CPU routine; this numpy DBSCAN
#             reproduces its semantics (eps / min_samples, noise label = -1).
# ----------------------------------------------------------------------------
def dbscan_numpy(points, eps, min_samples):
    pts = np.asarray(points, dtype=np.float64)
    n = pts.shape[0]
    d2 = ((pts[:, None, :] - pts[None, :, :]) ** 2).sum(-1)
    neigh = d2 <= eps * eps
    core = neigh.sum(1) >= min_samples
    labels = -np.ones(n, dtype=np.int32)
    cluster = 0
    for i in range(n):
        if labels[i] != -1 or not core[i]:
            continue
        labels[i] = cluster
        stack = [i]
        while stack:
            j = stack.pop()
            if core[j]:
                for kk in np.where(neigh[j])[0]:
                    if labels[kk] == -1:
                        labels[kk] = cluster
                        if core[kk]:
                            stack.append(int(kk))
        cluster += 1
    return labels


# ----------------------------------------------------------------------------
# Host-side algebraic fusion of the 12 Linear weights (computed in f64, cast to f32).
#
#   scores = s*(x Wq + bq) . (x Wk + bk)  ==  [x,1,0..] @ Maug @ [x,1,0..]^T
#   pre_relu(valid) = (p@x) Wv Wo W1 + (bv Wo + bo) W1 + b1  ==  ctx_aug @ Wv1_aug
#   pre_relu(noise) = bo W1 + b1
# ----------------------------------------------------------------------------
def fuse_params(params, scale):
    f64 = lambda a: np.asarray(a, np.float64)
    wq, bq = f64(params["wq"]), f64(params["bq"]).reshape(-1)
    wk, bk = f64(params["wk"]), f64(params["bk"]).reshape(-1)
    wv, bv = f64(params["wv"]), f64(params["bv"]).reshape(-1)
    wo, bo = f64(params["wo"]), f64(params["bo"]).reshape(-1)
    w1, b1 = f64(params["w1"]), f64(params["b1"]).reshape(-1)
    w2, b2 = f64(params["w2"]), f64(params["b2"]).reshape(-1)
    H = w1.shape[1]

    maug = np.zeros((AUG, AUG), np.float64)
    maug[0:3, 0:3] = scale * (wq @ wk.T)
    maug[0:3, 3] = scale * (wq @ bk)
    maug[3, 0:3] = scale * (wk @ bq)
    maug[3, 3] = scale * float(bq @ bk)

    slab = np.zeros((SLAB_ROWS, LANES), np.float64)
    wv1 = wv @ wo @ w1                         # (3, H)
    b1_valid = bv @ wo @ w1 + bo @ w1 + b1     # (H,)
    b1_noise = bo @ w1 + b1                    # (H,)
    slab[ROW_WV1:ROW_WV1 + 3, :H] = wv1
    slab[ROW_WV1 + 3, :H] = b1_valid
    slab[ROW_B1N, :H] = b1_noise
    slab[ROW_B2, :b2.shape[0]] = b2
    slab[ROW_W2:ROW_W2 + H, :w2.shape[1]] = w2
    return jnp.asarray(maug, jnp.float32), jnp.asarray(slab, jnp.float32)


# ----------------------------------------------------------------------------
# Pallas kernel: one grid step; every stage is a single 2-D MXU matmul over the
# batch-flattened query rows. No batched einsums, no lane-slice broadcasts.
# ----------------------------------------------------------------------------
def _cluster_gen_kernel(xq_ref, xt_ref, xa_ref, mask_ref, noise_ref,
                        maug_ref, slab_ref, o_ref):
    f32 = jnp.float32

    # Fused query projection: (BK, 8) @ (8, 8) -> (BK, 8).
    qt = jnp.dot(xq_ref[...], maug_ref[...], preferred_element_type=f32)

    # Scores for all (query, key) pairs across the whole flattened batch:
    # (BK, 8) @ (8, BN) -> (BK, BN). The additive mask (precomputed host-side)
    # blocks cross-batch pairs, other-label pairs, and noise-query rows with -1e30.
    # NOTE: -1e30 masking assumes |scores| << 1e30 (true for bounded point clouds).
    scores = jnp.dot(qt, xt_ref[...], preferred_element_type=f32) + mask_ref[...]

    m = jnp.max(scores, axis=-1, keepdims=True)
    pu = jnp.exp(scores - m)                     # unnormalized attention weights

    # ctx_aug = pu @ [x | 1 | 0..]: lanes 0..2 = pu@x, lane 3 = rowsum(pu) (the softmax
    # denominator), so one exact divide normalizes both in a single (BK, 8) tile.
    ctx = jnp.dot(pu, xa_ref[...], preferred_element_type=f32)
    ctx = ctx / ctx[:, 3:4]                      # exact division (denominator >= 1)

    # Fused value-proj + out_proj + first MLP layer: (BK, 8) @ (8, 128).
    pre1 = jnp.dot(ctx, slab_ref[ROW_WV1:ROW_WV1 + AUG, :],
                   preferred_element_type=f32)
    b1n = slab_ref[ROW_B1N:ROW_B1N + 1, :]       # noise rows collapse to relu(bo@W1+b1)
    pre1 = b1n + noise_ref[...] * (pre1 - b1n)
    h = jnp.maximum(pre1, 0.0)

    # Final MLP layer, lane-dense unmasked store: (BK, 128) @ (128, 128) -> (BK, 128).
    o_ref[...] = (jnp.dot(h, slab_ref[ROW_W2:ROW_W2 + LANES, :],
                          preferred_element_type=f32)
                  + slab_ref[ROW_B2:ROW_B2 + 1, :])


def cluster_generator_forward(x, labels, params, K):
    """x: (B, N, 3) f32, labels: (B, N) int32 -> (B, K, 3) f32."""
    B, N, D = x.shape
    assert D == 3, "ClusterGenerator hard-codes an embed dim of 3"
    assert K <= N, "K query rows must exist in the point cloud"
    BK, BN = B * K, B * N
    scale = 1.0 / np.sqrt(D)                     # F.scaled_dot_product_attention default

    maug, slab = fuse_params(params, scale)

    # Augmented coordinates [x, y, z, 1, 0, 0, 0, 0] in the three layouts the kernel
    # needs (the transpose for the key side is wrapper-side layout plumbing, so the
    # kernel never transposes anything).
    x = x.astype(jnp.float32)
    x_aug = jnp.concatenate(
        [x, jnp.ones((B, N, 1), jnp.float32), jnp.zeros((B, N, AUG - D - 1), jnp.float32)],
        axis=-1)                                                     # (B, N, 8)
    xa_flat = x_aug.reshape(BN, AUG)                                 # keys      (BN, 8)
    xq_flat = x_aug[:, :K, :].reshape(BK, AUG)                       # queries   (BK, 8)
    xt_flat = xa_flat.T                                              # keys^T    (8, BN)

    # Host-side label mask: additive 0 / -1e30 including cross-batch blocking, plus a
    # noise-row multiplier, so the kernel does no integer compares or label broadcasts.
    lab = labels.astype(jnp.int32)
    lab_q = lab[:, :K]                                               # (B, K)
    same_batch = jnp.eye(B, dtype=bool)[:, None, :, None]            # (B,1,B,1)
    same_label = lab_q[:, :, None, None] == lab[None, None, :, :]    # (B,K,B,N)
    valid_q = (lab_q >= 0)[:, :, None, None]
    mask = jnp.where(same_batch & same_label & valid_q, 0.0, -1e30)
    mask = mask.astype(jnp.float32).reshape(BK, BN)
    noise = (lab_q >= 0).astype(jnp.float32).reshape(BK, 1)

    # Single grid step: on v5e/v6e (1 TC) this avoids all per-step overhead; on v7x a
    # CORE_PARALLEL split of the BK query rows could use the second TC if profiling
    # shows the ~us of work is worth sharding.
    out_padded = pl.pallas_call(
        _cluster_gen_kernel,
        out_shape=jax.ShapeDtypeStruct((BK, LANES), jnp.float32),
        grid_spec=pltpu.PrefetchScalarGridSpec(
            num_scalar_prefetch=0,
            grid=(1,),
            in_specs=[
                pl.BlockSpec((BK, AUG), lambda g: (0, 0)),           # queries (aug)
                pl.BlockSpec((AUG, BN), lambda g: (0, 0)),           # keys^T (aug)
                pl.BlockSpec((BN, AUG), lambda g: (0, 0)),           # keys (aug)
                pl.BlockSpec((BK, BN), lambda g: (0, 0)),            # additive mask
                pl.BlockSpec((BK, 1), lambda g: (0, 0)),             # noise multiplier
                pl.BlockSpec((AUG, AUG), lambda g: (0, 0)),          # fused q/k weights
                pl.BlockSpec((SLAB_ROWS, LANES), lambda g: (0, 0)),  # fused MLP slab
            ],
            out_specs=pl.BlockSpec((BK, LANES), lambda g: (0, 0)),
        ),
        compiler_params=pltpu.CompilerParams(
            dimension_semantics=("arbitrary",)),
    )(xq_flat, xt_flat, xa_flat, mask, noise, maug, slab)

    # Lane-dense (BK, 128) slab -> (B, K, 3).
    return out_padded.reshape(B, K, LANES)[..., :D]


# ----------------------------------------------------------------------------
# Pure numpy reference (mirrors the PyTorch per-group loop exactly).
# ----------------------------------------------------------------------------
def reference_forward(x, labels, params, K):
    p = {k: np.asarray(v) for k, v in params.items()}
    outs = []
    for i in range(x.shape[0]):
        pc = np.asarray(x[i], dtype=np.float32)
        lab = np.asarray(labels[i])
        out = np.zeros_like(pc)
        for l in np.unique(lab[lab != -1]):
            m = lab == l
            g = pc[m]
            q = g @ p["wq"] + p["bq"][0]
            k = g @ p["wk"] + p["bk"][0]
            v = g @ p["wv"] + p["bv"][0]
            s = (q @ k.T) / np.sqrt(pc.shape[-1])
            s = s - s.max(-1, keepdims=True)
            e = np.exp(s)
            out[m] = (e / e.sum(-1, keepdims=True)) @ v
        out = out @ p["wo"] + p["bo"][0]
        h = np.maximum(out @ p["w1"] + p["b1"][0], 0.0)
        y = h @ p["w2"] + p["b2"][0]
        outs.append(y[:K])
    return np.stack(outs)


# ----------------------------------------------------------------------------
# Deterministic parameter init (PyTorch nn.Linear default: U(-1/sqrt(in), 1/sqrt(in))).
# ----------------------------------------------------------------------------
def init_params(key, D, H):
    names_shapes = [
        ("wq", (D, D)), ("bq", (1, D)),
        ("wk", (D, D)), ("bk", (1, D)),
        ("wv", (D, D)), ("bv", (1, D)),
        ("wo", (D, D)), ("bo", (1, D)),
        ("w1", (D, H)), ("b1", (1, H)),
        ("w2", (H, D)), ("b2", (1, D)),
    ]
    fan_in = {"wq": D, "bq": D, "wk": D, "bk": D, "wv": D, "bv": D,
              "wo": D, "bo": D, "w1": D, "b1": D, "w2": H, "b2": H}
    params = {}
    keys = jax.random.split(key, len(names_shapes))
    for (name, shape), k in zip(names_shapes, keys):
        bound = 1.0 / np.sqrt(fan_in[name])
        params[name] = jax.random.uniform(k, shape, jnp.float32, -bound, bound)
    return params


if __name__ == "__main__":
    # Config (consistent with ClusterGenerator: input_dim must be 3 for the MLP).
    config = {"model": {"input_dim": 3, "hidden_dim": 32,
                        "eps": 0.6, "min_samples": 3, "K": 8}}
    B, N, D, H, K = 4, 64, 3, config["model"]["hidden_dim"], config["model"]["K"]

    key = jax.random.PRNGKey(0)
    kp, kc, kn = jax.random.split(key, 3)

    # Build clusterable point clouds: a few well-separated centers + noise.
    centers = jax.random.uniform(kc, (B, 4, D), jnp.float32, -4.0, 4.0)
    assign = np.tile(np.arange(N) % 4, (B, 1))
    pts = centers[np.arange(B)[:, None], assign]          # (B, N, D)
    pts = pts + 0.15 * jax.random.normal(kn, (B, N, D), jnp.float32)
    x = jnp.asarray(pts, jnp.float32)

    # Host-side clustering (stand-in for parallel_dbscan).
    labels_np = np.stack([
        dbscan_numpy(np.asarray(x[i]), config["model"]["eps"],
                     config["model"]["min_samples"])
        for i in range(B)
    ])
    labels = jnp.asarray(labels_np, jnp.int32)

    params = init_params(kp, D, H)

    out = cluster_generator_forward(x, labels, params, K)
    out = jax.block_until_ready(out)

    # Exact softmax normalization (no approx reciprocal); the small residual comes
    # from f32 re-association of the host-side weight fusion vs. the unfused reference.
    ref = reference_forward(np.asarray(x), labels_np, params, K)
    np.testing.assert_allclose(np.asarray(out), ref, rtol=1e-4, atol=1e-4)

    print("KERNEL_OK")
</pallas_src>

<mosaic_0001>
module attributes {stable_mosaic.version = 11 : i64} {
  func.func @_cluster_gen_kernel(%arg0: i32, %arg1: memref<32x8xf32, #tpu.memory_space<vmem>>, %arg2: memref<8x256xf32, #tpu.memory_space<vmem>>, %arg3: memref<256x8xf32, #tpu.memory_space<vmem>>, %arg4: memref<32x256xf32, #tpu.memory_space<vmem>>, %arg5: memref<32x1xf32, #tpu.memory_space<vmem>>, %arg6: memref<8x8xf32, #tpu.memory_space<vmem>>, %arg7: memref<152x128xf32, #tpu.memory_space<vmem>>, %arg8: memref<32x128xf32, #tpu.memory_space<vmem>>) attributes {dimension_semantics = [#tpu.dimension_semantics<arbitrary>], iteration_bounds = array<i64: 1>, scalar_prefetch = 0 : i64, scratch_operands = 0 : i64, tpu.core_type = #tpu.core_type<tc>, window_params = [{pipeline_mode = #tpu.pipeline_mode<synchronous>, transform_indices = @transform_0, window_bounds = array<i64: 32, 8>}, {pipeline_mode = #tpu.pipeline_mode<synchronous>, transform_indices = @transform_1, window_bounds = array<i64: 8, 256>}, {pipeline_mode = #tpu.pipeline_mode<synchronous>, transform_indices = @transform_2, window_bounds = array<i64: 256, 8>}, {pipeline_mode = #tpu.pipeline_mode<synchronous>, transform_indices = @transform_3, window_bounds = array<i64: 32, 256>}, {pipeline_mode = #tpu.pipeline_mode<synchronous>, transform_indices = @transform_4, window_bounds = array<i64: 32, 1>}, {pipeline_mode = #tpu.pipeline_mode<synchronous>, transform_indices = @transform_5, window_bounds = array<i64: 8, 8>}, {pipeline_mode = #tpu.pipeline_mode<synchronous>, transform_indices = @transform_6, window_bounds = array<i64: 152, 128>}, {pipeline_mode = #tpu.pipeline_mode<synchronous>, transform_indices = @transform_7, window_bounds = array<i64: 32, 128>}]} {
    %c0 = arith.constant 0 : index
    %c0_0 = arith.constant 0 : index
    %0 = vector.load %arg1[%c0, %c0_0] : memref<32x8xf32, #tpu.memory_space<vmem>>, vector<32x8xf32>
    %c0_1 = arith.constant 0 : index
    %c0_2 = arith.constant 0 : index
    %1 = vector.load %arg6[%c0_1, %c0_2] : memref<8x8xf32, #tpu.memory_space<vmem>>, vector<8x8xf32>
    %cst = arith.constant dense<0.000000e+00> : vector<32x8xf32>
    %2 = tpu.matmul %0, %1, %cst {dimension_numbers = #tpu.dot_dimension_numbers<[1], [0], [0], [1], [0, 0, 1, 1], [], []>} : vector<32x8xf32>, vector<8x8xf32>, vector<32x8xf32> -> vector<32x8xf32>
    %c0_3 = arith.constant 0 : index
    %c0_4 = arith.constant 0 : index
    %3 = vector.load %arg2[%c0_3, %c0_4] : memref<8x256xf32, #tpu.memory_space<vmem>>, vector<8x256xf32>
    %cst_5 = arith.constant dense<0.000000e+00> : vector<32x256xf32>
    %4 = tpu.matmul %2, %3, %cst_5 {dimension_numbers = #tpu.dot_dimension_numbers<[1], [0], [0], [1], [0, 0, 1, 1], [], []>} : vector<32x8xf32>, vector<8x256xf32>, vector<32x256xf32> -> vector<32x256xf32>
    %c0_6 = arith.constant 0 : index
    %c0_7 = arith.constant 0 : index
    %5 = vector.load %arg4[%c0_6, %c0_7] : memref<32x256xf32, #tpu.memory_space<vmem>>, vector<32x256xf32>
    %6 = arith.addf %4, %5 : vector<32x256xf32>
    %cst_8 = arith.constant dense<0xFF800000> : vector<32xf32>
    %7 = vector.multi_reduction <maximumf>, %6, %cst_8 [1] : vector<32x256xf32> to vector<32xf32>
    %8 = vector.shape_cast %7 : vector<32xf32> to vector<32x1xf32>
    %9 = vector.broadcast %8 : vector<32x1xf32> to vector<32x256xf32>
    %10 = arith.subf %6, %9 : vector<32x256xf32>
    %11 = math.exp %10 : vector<32x256xf32>
    %c0_9 = arith.constant 0 : index
    %c0_10 = arith.constant 0 : index
    %12 = vector.load %arg3[%c0_9, %c0_10] : memref<256x8xf32, #tpu.memory_space<vmem>>, vector<256x8xf32>
    %cst_11 = arith.constant dense<0.000000e+00> : vector<32x8xf32>
    %13 = tpu.matmul %11, %12, %cst_11 {dimension_numbers = #tpu.dot_dimension_numbers<[1], [0], [0], [1], [0, 0, 1, 1], [], []>} : vector<32x256xf32>, vector<256x8xf32>, vector<32x8xf32> -> vector<32x8xf32>
    %14 = vector.extract_strided_slice %13 {offsets = [0, 3], sizes = [32, 1], strides = [1, 1]} : vector<32x8xf32> to vector<32x1xf32>
    %15 = vector.broadcast %14 : vector<32x1xf32> to vector<32x8xf32>
    %16 = arith.divf %13, %15 : vector<32x8xf32>
    %c0_12 = arith.constant 0 : index
    %c0_13 = arith.constant 0 : index
    %17 = vector.load %arg7[%c0_12, %c0_13] : memref<152x128xf32, #tpu.memory_space<vmem>>, vector<8x128xf32>
    %cst_14 = arith.constant dense<0.000000e+00> : vector<32x128xf32>
    %18 = tpu.matmul %16, %17, %cst_14 {dimension_numbers = #tpu.dot_dimension_numbers<[1], [0], [0], [1], [0, 0, 1, 1], [], []>} : vector<32x8xf32>, vector<8x128xf32>, vector<32x128xf32> -> vector<32x128xf32>
    %c8 = arith.constant 8 : index
    %c0_15 = arith.constant 0 : index
    %19 = vector.load %arg7[%c8, %c0_15] : memref<152x128xf32, #tpu.memory_space<vmem>>, vector<1x128xf32>
    %c0_16 = arith.constant 0 : index
    %c0_17 = arith.constant 0 : index
    %20 = vector.load %arg5[%c0_16, %c0_17] : memref<32x1xf32, #tpu.memory_space<vmem>>, vector<32x1xf32>
    %21 = vector.broadcast %19 : vector<1x128xf32> to vector<32x128xf32>
    %22 = arith.subf %18, %21 : vector<32x128xf32>
    %23 = vector.broadcast %20 : vector<32x1xf32> to vector<32x128xf32>
    %24 = arith.mulf %23, %22 : vector<32x128xf32>
    %25 = vector.broadcast %19 : vector<1x128xf32> to vector<32x128xf32>
    %26 = arith.addf %25, %24 : vector<32x128xf32>
    %cst_18 = arith.constant 0.000000e+00 : f32
    %27 = vector.broadcast %cst_18 : f32 to vector<32x128xf32>
    %28 = arith.maximumf %26, %27 : vector<32x128xf32>
    %c24 = arith.constant 24 : index
    %c0_19 = arith.constant 0 : index
    %29 = vector.load %arg7[%c24, %c0_19] : memref<152x128xf32, #tpu.memory_space<vmem>>, vector<128x128xf32>
    %cst_20 = arith.constant dense<0.000000e+00> : vector<32x128xf32>
    %30 = tpu.matmul %28, %29, %cst_20 {dimension_numbers = #tpu.dot_dimension_numbers<[1], [0], [0], [1], [0, 0, 1, 1], [], []>} : vector<32x128xf32>, vector<128x128xf32>, vector<32x128xf32> -> vector<32x128xf32>
    %c16 = arith.constant 16 : index
    %c0_21 = arith.constant 0 : index
    %31 = vector.load %arg7[%c16, %c0_21] : memref<152x128xf32, #tpu.memory_space<vmem>>, vector<1x128xf32>
    %32 = vector.broadcast %31 : vector<1x128xf32> to vector<32x128xf32>
    %33 = arith.addf %30, %32 : vector<32x128xf32>
    %c0_22 = arith.constant 0 : index
    %c0_23 = arith.constant 0 : index
    %34 = vector.load %arg8[%c0_22, %c0_23] : memref<32x128xf32, #tpu.memory_space<vmem>>, vector<32x128xf32>
    tpu.vector_store %arg8[%c0_22, %c0_23], %33 {strides = array<i32>} : memref<32x128xf32, #tpu.memory_space<vmem>>, vector<32x128xf32>,
    return
  }
  func.func @transform_0(%arg0: i32) -> (i32, i32) {
    %c0_i32 = arith.constant 0 : i32
    %c0_i32_0 = arith.constant 0 : i32
    %c0_i32_1 = arith.constant 0 : i32
    return %c0_i32, %c0_i32_0 : i32, i32
  }
  func.func @transform_1(%arg0: i32) -> (i32, i32) {
    %c0_i32 = arith.constant 0 : i32
    %c0_i32_0 = arith.constant 0 : i32
    %c0_i32_1 = arith.constant 0 : i32
    return %c0_i32, %c0_i32_0 : i32, i32
  }
  func.func @transform_2(%arg0: i32) -> (i32, i32) {
    %c0_i32 = arith.constant 0 : i32
    %c0_i32_0 = arith.constant 0 : i32
    %c0_i32_1 = arith.constant 0 : i32
    return %c0_i32, %c0_i32_0 : i32, i32
  }
  func.func @transform_3(%arg0: i32) -> (i32, i32) {
    %c0_i32 = arith.constant 0 : i32
    %c0_i32_0 = arith.constant 0 : i32
    %c0_i32_1 = arith.constant 0 : i32
    return %c0_i32, %c0_i32_0 : i32, i32
  }
  func.func @transform_4(%arg0: i32) -> (i32, i32) {
    %c0_i32 = arith.constant 0 : i32
    %c0_i32_0 = arith.constant 0 : i32
    %c0_i32_1 = arith.constant 0 : i32
    return %c0_i32, %c0_i32_0 : i32, i32
  }
  func.func @transform_5(%arg0: i32) -> (i32, i32) {
    %c0_i32 = arith.constant 0 : i32
    %c0_i32_0 = arith.constant 0 : i32
    %c0_i32_1 = arith.constant 0 : i32
    return %c0_i32, %c0_i32_0 : i32, i32
  }
  func.func @transform_6(%arg0: i32) -> (i32, i32) {
    %c0_i32 = arith.constant 0 : i32
    %c0_i32_0 = arith.constant 0 : i32
    %c0_i32_1 = arith.constant 0 : i32
    return %c0_i32, %c0_i32_0 : i32, i32
  }
  func.func @transform_7(%arg0: i32) -> (i32, i32) {
    %c0_i32 = arith.constant 0 : i32
    %c0_i32_0 = arith.constant 0 : i32
    %c0_i32_1 = arith.constant 0 : i32
    return %c0_i32, %c0_i32_0 : i32, i32
  }
}

</mosaic_0001>

<bundles_post_ra>
// kernel: tpu_custom_call.1
= control target key start
LH: loop header
LB: loop body
LE: loop exit
PB: predicated region body
PF: predicated region fallthrough
CT: control target
= control target key end

     0   :  { %vm32_vm0 = vcmask 64512   ;;  %s1259_s0 = inlined_call_operand.vmem [shape: f32[32,8], index: 0, kind: input, shape index: {}]   ;;  %s1260_s1 = inlined_call_operand.vmem [shape: f32[8,256], index: 1, kind: input, shape index: {}]   ;;  %s1261_s2 = inlined_call_operand.vmem [shape: f32[256,8], index: 2, kind: input, shape index: {}]   ;;  %s1262_s3 = inlined_call_operand.vmem [shape: f32[32,256], index: 3, kind: input, shape index: {}]   ;;  %s1263_s4 = inlined_call_operand.vmem [shape: f32[32,1], index: 4, kind: input, shape index: {}]   ;;  %s1264_s5 = inlined_call_operand.vmem [shape: f32[8,8], index: 5, kind: input, shape index: {}]   ;;  %s1265_s6 = inlined_call_operand.vmem [shape: f32[152,128], index: 6, kind: input, shape index: {}]   ;;  %s1266_s7 = inlined_call_operand.hbm [shape: f32[32,128], index: 7, kind: output, shape index: {}]  }
   0x1   :  { %v31_v0 = vld [vmem:[%s1264_s5] sm:$0xff]  ;;  %v28_v2 = vld [vmem:[%s1259_s0 + $0x8] sm:$0xff]  ;;  %v29_v3 = vld [vmem:[%s1259_s0 + $0x10] sm:$0xff] }
   0x2   :  { %v27_v1 = vld [vmem:[%s1259_s0] sm:$0xff]  ;;  %779 = vmatprep.subr.mxu0 %v31_v0 }
   0x3   :  { %781 = vmatprep.mubr.msk.f32.mxu0 %vm32_vm0, %v27_v1 }
   0x4   :  { %12 = vsyncpa [#allocation3], 0  ;;  %780 = vmatpush3.msra.mxu0 %v31_v0  ;;  %v30_v4 = vld [vmem:[%s1259_s0 + $0x18] sm:$0xff]  ;;  %v131_v5 = vld [vmem:[%s1260_s1 + $0x8] sm:$0xff]  ;;  %v955_v7 = vmov 0.0   ;;  %s958_s28 = smov [#allocation2]  }
   0x5   :  { %782 = vmatmul.mubr.msk.f32.vlgmr.msra.gmra.mrb[0].mxu0 %vm32_vm0, %v28_v2  ;;  %152 = vmatprep.subr.mxu1 %v131_v5  ;;  %v130_v6 = vld [vmem:[%s1260_s1] sm:$0xff]  ;;  %v294_v13 = vld [vmem:[%s1261_s2 + $0x88] sm:$0xff]  ;;  %v295_v17 = vld [vmem:[%s1261_s2 + $0x90] sm:$0xff] }
   0x6   :  { %784 = vmatprep.mubr.msk.f32.mxu0 %vm32_vm0, %v29_v3  ;;  %153 = vmatpush1.msra.mxu1 %v130_v6  ;;  %v293_v12 = vld [vmem:[%s1261_s2 + $0x80] sm:$0xff]  ;;  %v278_v16 = vld [vmem:[%s1261_s2 + $0x8] sm:$0xff]  ;;  %v296_v18 = vld [vmem:[%s1261_s2 + $0x98] sm:$0xff] }
   0x7   :  { %216 = vmatprep.mubr.f32.mxu1 %v955_v7  ;;  %v277_v14 = vld [vmem:[%s1261_s2] sm:$0xff]  ;;  %v833_v15 = vpack.c.bf16 %v294_v13, %v293_v12  ;;  %v837_v20 = vpack.c.bf16 %v296_v18, %v295_v17  ;;  %v279_v21 = vld [vmem:[%s1261_s2 + $0x10] sm:$0xff]  ;;  %v280_v22 = vld [vmem:[%s1261_s2 + $0x18] sm:$0xff] }
   0x8   :  { %v835_v19 = vpack.c.bf16 %v278_v16, %v277_v14  ;;  %v297_v23 = vld [vmem:[%s1261_s2 + $0xa0] sm:$0xff]  ;;  %v298_v24 = vld [vmem:[%s1261_s2 + $0xa8] sm:$0xff]  ;;  %v839_v25 = vpack.c.bf16 %v280_v22, %v279_v21  ;;  %v299_v29 = vld [vmem:[%s1261_s2 + $0xb0] sm:$0xff] }
   0x9   :  { %785 = vmatmul.mubr.msk.f32.gmra.mrb[2].mxu0 %vm32_vm0, %v30_v4  ;;  %834 = vmatprep.subr.bf16.mxu0 %v833_v15  ;;  %v841_v26 = vpack.c.bf16 %v298_v24, %v297_v23  ;;  %v281_v27 = vld [vmem:[%s1261_s2 + $0x20] sm:$0xff]  ;;  %v282_v28 = vld [vmem:[%s1261_s2 + $0x28] sm:$0xff]  ;;  %v300_v30 = vld [vmem:[%s1261_s2 + $0xb8] sm:$0xff] }
   0xa   :  { %836 = vmatpush3.bf16.msra.mxu0 %v835_v19  ;;  %v843_v31 = vpack.c.bf16 %v282_v28, %v281_v27  ;;  %v845_v32 = vpack.c.bf16 %v300_v30, %v299_v29  ;;  %v283_v33 = vld [vmem:[%s1261_s2 + $0x30] sm:$0xff]  ;;  %v284_v34 = vld [vmem:[%s1261_s2 + $0x38] sm:$0xff]  ;;  %v132_v36 = vld [vmem:[%s1262_s3] sm:$0xff] }
   0xb   :  { %838 = vmatprep.subr.bf16.mxu0 %v837_v20  ;;  %v847_v35 = vpack.c.bf16 %v284_v34, %v283_v33  ;;  %v133_v37 = vld [vmem:[%s1262_s3 + $0x8] sm:$0xff]  ;;  %v134_v42 = vld [vmem:[%s1262_s3 + $0x10] sm:$0xff]  ;;  %v135_v43 = vld [vmem:[%s1262_s3 + $0x18] sm:$0xff] }
   0xc   :  { %v136_v49 = vld [vmem:[%s1262_s3 + $0x20] sm:$0xff]  ;;  %v137_v50 = vld [vmem:[%s1262_s3 + $0x28] sm:$0xff]  ;;  %v138_v56 = vld [vmem:[%s1262_s3 + $0x30] sm:$0xff] }
   0xd   :  { %v139_v57 = vld [vmem:[%s1262_s3 + $0x38] sm:$0xff]  ;;  %v301_v0 = vld [vmem:[%s1261_s2 + $0xc0] sm:$0xff]  ;;  %v302_v1 = vld [vmem:[%s1261_s2 + $0xc8] sm:$0xff] }
   0xe   :  { %840 = vmatpush3.bf16.msra.mxu0 %v839_v25  ;;  %v849_v2 = vpack.c.bf16 %v302_v1, %v301_v0  ;;  %v285_v3 = vld [vmem:[%s1261_s2 + $0x40] sm:$0xff]  ;;  %v286_v4 = vld [vmem:[%s1261_s2 + $0x48] sm:$0xff]  ;;  %v303_v6 = vld [vmem:[%s1261_s2 + $0xd0] sm:$0xff] }
   0xf   :  { %842 = vmatprep.subr.bf16.mxu0 %v841_v26  ;;  %v851_v5 = vpack.c.bf16 %v286_v4, %v285_v3  ;;  %v305_v12 = vld [vmem:[%s1261_s2 + $0xe0] sm:$0xff]  ;;  %v306_v13 = vld [vmem:[%s1261_s2 + $0xe8] sm:$0xff]  ;;  %v307_v18 = vld [vmem:[%s1261_s2 + $0xf0] sm:$0xff]  ;;  %v957_v3 = vmov 0  }
  0x10   :  { %v857_v14 = vpack.c.bf16 %v306_v13, %v305_v12  ;;  %v289_v15 = vld [vmem:[%s1261_s2 + $0x60] sm:$0xff]  ;;  %v290_v16 = vld [vmem:[%s1261_s2 + $0x68] sm:$0xff]  ;;  %v308_v19 = vld [vmem:[%s1261_s2 + $0xf8] sm:$0xff] }
  0x11   :  { %v859_v17 = vpack.c.bf16 %v290_v16, %v289_v15  ;;  %v861_v20 = vpack.c.bf16 %v308_v19, %v307_v18  ;;  %v291_v21 = vld [vmem:[%s1261_s2 + $0x70] sm:$0xff]  ;;  %v292_v22 = vld [vmem:[%s1261_s2 + $0x78] sm:$0xff]  ;;  %v422_v1 = vld [vmem:[%s1265_s6] sm:$0xff] }
  0x12   :  { %844 = vmatpush3.bf16.msra.mxu0 %v843_v31  ;;  %v863_v23 = vpack.c.bf16 %v292_v22, %v291_v21  ;;  %787 = vmatprep.subr.mxu1 %v422_v1  ;;  %v565_v4 = vld [vmem:[%s1265_s6 + $0x18] sm:$0xff]  ;;  %v567_v16 = vld [vmem:[%s1265_s6 + $0x28] sm:$0xff]  ;;  %v570_v22 = vld [vmem:[%s1265_s6 + $0x40] sm:$0xff] }
  0x13   :  { %846 = vmatprep.subr.bf16.mxu0 %v845_v32  ;;  %v569_v21 = vld [vmem:[%s1265_s6 + $0x38] sm:$0xff] }
  0x16   :  { %848 = vmatpush3.bf16.msra.mxu0 %v847_v35 }
  0x17   :  { %850 = vmatprep.subr.bf16.mxu0 %v849_v2  ;;  %v521_v2 = vld [vmem:[%s1263_s4] sm:$0xff] }
  0x1a   :  { %852 = vmatpush3.bf16.msra.mxu0 %v851_v5  ;;  %v566_v5 = vld [vmem:[%s1265_s6 + $0x20] sm:$0xff] }
  0xd8   :  { %v783_v8 = vpop.f32.mrb[0].mxu0 }
  0xd9   :  { %v111_v9 = vpop.f32.mrb[1].mxu0 }
  0xda   :  { %695 = vmatmul.mubr.msk.f32.vlgmr.msra.gmra.mrb[0].mxu1 %vm32_vm0, %v111_v9  ;;  %v287_v9 = vld [vmem:[%s1261_s2 + $0x50] sm:$0xff] }
  0xdb   :  { %222 = vmatprep.mubr.f32.mxu1 %v955_v7  ;;  %788 = vmatpush3.msra.mxu1 %v422_v1 }
  0xdc   :  { %v786_v10 = vpop.f32.mrb[2].mxu0 }
  0xdd   :  { %v121_v11 = vpop.f32.mrb[3].mxu0 }
  0xde   :  { %696 = vmatmul.mubr.msk.f32.gmra.mrb[2].mxu1 %vm32_vm0, %v783_v8 }
  0xdf   :  { %228 = vmatprep.mubr.f32.mxu1 %v955_v7 }
  0xe2   :  { %697 = vmatmul.mubr.msk.f32.gmra.mrb[4].mxu1 %vm32_vm0, %v121_v11 }
  0xe3   :  { %234 = vmatprep.mubr.f32.mxu1 %v955_v7  ;;  %v304_v7 = vld [vmem:[%s1261_s2 + $0xd8] sm:$0xff] }
  0xe4   :  { %v853_v8 = vpack.c.bf16 %v304_v7, %v303_v6  ;;  %v865_v6 = vpack.c.bf16 %v566_v5, %v565_v4  ;;  %v522_v7 = vld [vmem:[%s1263_s4 + $0x8] sm:$0xff]  ;;  %v704_v4 = vld [vmem:[%s1265_s6 + $0x10] ss:$0 sm:$0xff] }
  0xe6   :  { %698 = vmatmul.mubr.msk.f32.gmra.mrb[6].mxu1 %vm32_vm0, %v786_v10  ;;  %v288_v10 = vld [vmem:[%s1261_s2 + $0x58] sm:$0xff]  ;;  %854 = vmatprep.subr.bf16.mxu0 %v853_v8  ;;  %v523_v8 = vld [vmem:[%s1263_s4 + $0x10] sm:$0xff] }
  0xe7   :  { %v855_v11 = vpack.c.bf16 %v288_v10, %v287_v9  ;;  %866 = vmatprep.subr.bf16.mxu1 %v865_v6  ;;  %v524_v9 = vld [vmem:[%s1263_s4 + $0x18] sm:$0xff]  ;;  %s680_s4 = sshll.u32 %s958_s28, 4  ;;  %s681_s4 = int_to_ptr.vmem [resolvable:$true] %s680_s4 }
  0xe8   :  { %s931_s29 = scalar_lea.vmem %s681_s4, 512  ;;  %p936_p1 = scmp.lt.s32.totalorder %s681_s4, %s681_s4 }
  0xe9   :  { %856 = vmatpush3.bf16.msra.mxu0 %v855_v11  ;;  %p932_p0 = scmp.ne.s32.totalorder %s681_s4, %s931_s29  ;;  %p937_p2 = scmp.lt.s32.totalorder %s931_s29, %s931_s29 }
  0xea   :  { %858 = vmatprep.subr.bf16.mxu0 %v857_v14 }
  0xeb   :  { %p938_p3 = por %p937_p2, %p936_p1 }
  0xed   :  { %860 = vmatpush3.bf16.msra.mxu0 %v859_v17  ;;  %v568_v17 = vld [vmem:[%s1265_s6 + $0x30] sm:$0xff]  ;;  %p939_p4 = pnand %p938_p3, %p932_p0 }
  0xee   :  { %862 = vmatprep.subr.bf16.mxu0 %v861_v20  ;;  %v869_v20 = vpack.c.bf16 %v568_v17, %v567_v16 }
  0xf1   :  { %864 = vmatpush3.bf16.msra.mxu0 %v863_v23 }
 0x1ad   :  { %v218_v38 = vpop.f32.mrb[0].mxu1 }
 0x1ae   :  { %v1084_v39 = vadd.f32 %v218_v38, %v132_v36  ;;  %v220_v40 = vpop.f32.mrb[1].mxu1 }
 0x1af   :  { %v1086_v41 = vadd.f32 %v220_v40, %v133_v37 }
 0x1b1   :  { %v224_v44 = vpop.f32.mrb[2].mxu1  ;;  %v241_v45 = vmax.f32 %v1084_v39, %v1086_v41 }
 0x1b2   :  { %v1096_v46 = vadd.f32 %v224_v44, %v134_v42  ;;  %v226_v47 = vpop.f32.mrb[3].mxu1 }
 0x1b3   :  { %v1098_v48 = vadd.f32 %v226_v47, %v135_v43  ;;  %242 = vmax.xlane.f32.xlu0 %v241_v45 }
 0x1b5   :  { %v230_v51 = vpop.f32.mrb[4].mxu1  ;;  %v244_v52 = vmax.f32 %v1096_v46, %v1098_v48 }
 0x1b6   :  { %v1108_v53 = vadd.f32 %v230_v51, %v136_v49  ;;  %v232_v54 = vpop.f32.mrb[5].mxu1 }
 0x1b7   :  { %v233_v55 = vadd.f32 %v232_v54, %v137_v50  ;;  %245 = vmax.xlane.f32.xlu0 %v244_v52  ;;  %v956_v52 = vmov 3  }
 0x1b8   :  { %903 = vset.pattern.permute.xlu0 %v956_v52  ;;  %904 = vset.pattern.permute.xlu1 %v956_v52 }
 0x1b9   :  { %v236_v58 = vpop.f32.mrb[6].mxu1  ;;  %v247_v59 = vmax.f32 %v1108_v53, %v233_v55 }
 0x1ba   :  { %v1117_v60 = vadd.f32 %v236_v58, %v138_v56  ;;  %v238_v61 = vpop.f32.mrb[7].mxu1 }
 0x1bb   :  { %v239_v62 = vadd.f32 %v238_v61, %v139_v57  ;;  %248 = vmax.xlane.f32.xlu1 %v247_v59 }
 0x1bd   :  { %v250_v63 = vmax.f32 %v1117_v60, %v239_v62 }
 0x1bf   :  { %251 = vmax.xlane.f32.xlu1 %v250_v63 }
 0x240   :  { %v243_v24 = vpop.xlane.xlu0 %242 }
 0x241   :  { %v253_v25 = vsub.f32 %v1084_v39, %v243_v24  ;;  %v254_v26 = vsub.f32 %v1086_v41, %v243_v24 }
 0x243   :  { %v261_v27 = vmul.f32 1.442695, %v253_v25  ;;  %v263_v28 = vmul.f32 1.442695, %v254_v26  ;;  %v873_v25 = vpack.c.bf16 %v570_v22, %v569_v21  ;;  %v571_v26 = vld [vmem:[%s1265_s6 + $0x48] sm:$0xff] }
 0x244   :  { %v246_v29 = vpop.xlane.xlu0 %245 }
 0x245   :  { %907 = vpow2.f32 %v261_v27  ;;  %v255_v30 = vsub.f32 %v1096_v46, %v246_v29  ;;  %v256_v31 = vsub.f32 %v1098_v48, %v246_v29  ;;  %v572_v27 = vld [vmem:[%s1265_s6 + $0x50] sm:$0xff] }
 0x246   :  { %909 = vpow2.f32 %v263_v28 }
 0x247   :  { %v265_v32 = vmul.f32 1.442695, %v255_v30  ;;  %v267_v33 = vmul.f32 1.442695, %v256_v31  ;;  %v877_v30 = vpack.c.bf16 %v572_v27, %v571_v26  ;;  %v573_v31 = vld [vmem:[%s1265_s6 + $0x58] sm:$0xff] }
 0x248   :  { %v249_v34 = vpop.xlane.xlu1 %248 }
 0x249   :  { %911 = vpow2.f32 %v265_v32  ;;  %v257_v35 = vsub.f32 %v1108_v53, %v249_v34  ;;  %v258_v36 = vsub.f32 %v233_v55, %v249_v34  ;;  %v574_v32 = vld [vmem:[%s1265_s6 + $0x60] sm:$0xff]  ;;  %v575_v34 = vld [vmem:[%s1265_s6 + $0x68] sm:$0xff] }
 0x24a   :  { %913 = vpow2.f32 %v267_v33  ;;  %v881_v33 = vpack.c.bf16 %v574_v32, %v573_v31 }
 0x24b   :  { %v269_v37 = vmul.f32 1.442695, %v257_v35  ;;  %v271_v38 = vmul.f32 1.442695, %v258_v36  ;;  %v576_v35 = vld [vmem:[%s1265_s6 + $0x70] sm:$0xff] }
 0x24c   :  { %v252_v39 = vpop.xlane.xlu1 %251  ;;  %v885_v36 = vpack.c.bf16 %v576_v35, %v575_v34 }
 0x24d   :  { %915 = vpow2.f32 %v269_v37  ;;  %v259_v40 = vsub.f32 %v1117_v60, %v252_v39  ;;  %v260_v41 = vsub.f32 %v239_v62, %v252_v39  ;;  %v577_v37 = vld [vmem:[%s1265_s6 + $0x78] sm:$0xff] }
 0x24e   :  { %917 = vpow2.f32 %v271_v38  ;;  %v578_v38 = vld [vmem:[%s1265_s6 + $0x80] sm:$0xff] }
 0x24f   :  { %v908_v42 = vpop.eup %907  ;;  %v273_v43 = vmul.f32 1.442695, %v259_v40  ;;  %v275_v44 = vmul.f32 1.442695, %v260_v41  ;;  %v889_v39 = vpack.c.bf16 %v578_v38, %v577_v37  ;;  %v579_v40 = vld [vmem:[%s1265_s6 + $0x88] sm:$0xff]  ;;  %v580_v41 = vld [vmem:[%s1265_s6 + $0x90] sm:$0xff] }
 0x250   :  { %v910_v45 = vpop.eup %909 }
 0x251   :  { %919 = vpow2.f32 %v273_v43  ;;  %373 = vmatprep.mubr.f32.mxu0 %v910_v45  ;;  %v703_v45 = vld [vmem:[%s1265_s6 + $0x8] ss:$0 sm:$0xff] }
 0x252   :  { %921 = vpow2.f32 %v275_v44  ;;  %374 = vmatmul.mubr.f32.vlgmr.msra.gmra.mrb[4].mxu0 %v908_v42  ;;  %v893_v42 = vpack.c.bf16 %v580_v41, %v579_v40 }
 0x253   :  { %v912_v46 = vpop.eup %911 }
 0x254   :  { %v914_v47 = vpop.eup %913 }
 0x255   :  { %378 = vmatprep.mubr.f32.mxu0 %v914_v47 }
 0x256   :  { %379 = vmatmul.mubr.f32.gmra.mrb[6].mxu0 %v912_v46 }
 0x257   :  { %v916_v48 = vpop.eup %915 }
 0x258   :  { %v918_v49 = vpop.eup %917 }
 0x259   :  { %383 = vmatprep.mubr.f32.mxu0 %v918_v49 }
 0x25a   :  { %384 = vmatmul.mubr.f32.gmra.mrb[8].mxu0 %v916_v48 }
 0x25b   :  { %v920_v50 = vpop.eup %919 }
 0x25c   :  { %v922_v51 = vpop.eup %921 }
 0x25d   :  { %388 = vmatprep.mubr.f32.mxu0 %v922_v51 }
 0x25e   :  { %389 = vmatmul.mubr.f32.gmra.mrb[10].mxu0 %v920_v50 }
 0x325   :  { %v742_v53 = vpop.f32.mrb[4].mxu0 }
 0x326   :  { %v743_v54 = vpop.f32.mrb[5].mxu0 }
 0x327   :  { %v744_v55 = vadd.f32 %v743_v54, %v742_v53 }
 0x329   :  { %v745_v56 = vpop.f32.mrb[6].mxu0  ;;  %396 = vperm.xlu0 %903, %v744_v55  }
 0x32a   :  { %v746_v57 = vpop.f32.mrb[7].mxu0 }
 0x32b   :  { %v747_v58 = vadd.f32 %v746_v57, %v745_v56 }
 0x32d   :  { %401 = vperm.xlu1 %904, %v747_v58   ;;  %v748_v59 = vpop.f32.mrb[8].mxu0  ;;  %906 = vset.pattern.permute.xlu0 %v957_v3 }
 0x32e   :  { %v749_v60 = vpop.f32.mrb[9].mxu0 }
 0x32f   :  { %v750_v61 = vadd.f32 %v749_v60, %v748_v59 }
 0x331   :  { %406 = vperm.xlu1 %904, %v750_v61   ;;  %v751_v62 = vpop.f32.mrb[10].mxu0 }
 0x332   :  { %v752_v63 = vpop.f32.mrb[11].mxu0 }
 0x333   :  { %v753_v0 = vadd.f32 %v752_v63, %v751_v62 }
 0x335   :  { %411 = vperm.xlu1 %904, %v753_v0  }
 0x339   :  { %905 = vset.pattern.permute.xlu1 %v957_v3 }
 0x33a   :  { %535 = vperm.xlu1 %905, %v521_v2  }
 0x33e   :  { %540 = vperm.xlu1 %905, %v522_v7  }
 0x342   :  { %545 = vperm.xlu1 %905, %v523_v8  }
 0x346   :  { %550 = vperm.xlu1 %905, %v524_v9  }
 0x3a8   :  { %v397_v10 = vpop.permute.xlu0 %396 }
 0x3a9   :  { %923 = vrcp.f32 %v397_v10 }
 0x3ac   :  { %v402_v11 = vpop.permute.xlu1 %401 }
 0x3ad   :  { %925 = vrcp.f32 %v402_v11 }
 0x3b0   :  { %v407_v12 = vpop.permute.xlu1 %406 }
 0x3b1   :  { %927 = vrcp.f32 %v407_v12 }
 0x3b3   :  { %v924_v13 = vpop.eup %923 }
 0x3b4   :  { %v412_v14 = vpop.permute.xlu1 %411  ;;  %v415_v15 = vmul.f32 %v924_v13, %v744_v55 }
 0x3b5   :  { %929 = vrcp.f32 %v412_v14 }
 0x3b6   :  { %789 = vmatprep.mubr.msk.f32.mxu1 %vm32_vm0, %v415_v15 }
 0x3b7   :  { %v926_v18 = vpop.eup %925 }
 0x3b8   :  { %v417_v19 = vmul.f32 %v926_v18, %v747_v58 }
 0x3b9   :  { %v536_v43 = vpop.permute.xlu1 %535 }
 0x3ba   :  { %790 = vmatmul.mubr.msk.f32.vlgmr.msra.gmra.mrb[8].mxu1 %vm32_vm0, %v417_v19 }
 0x3bb   :  { %v928_v23 = vpop.eup %927  ;;  %868 = vmatpush3.bf16.msra.mxu1 %v865_v6 }
 0x3bc   :  { %v419_v24 = vmul.f32 %v928_v23, %v750_v61  ;;  %870 = vmatprep.subr.bf16.mxu1 %v869_v20 }
 0x3bd   :  { %v541_v44 = vpop.permute.xlu1 %540 }
 0x3be   :  { %792 = vmatprep.mubr.msk.f32.mxu1 %vm32_vm0, %v419_v24 }
 0x3bf   :  { %v930_v28 = vpop.eup %929  ;;  %872 = vmatpush3.bf16.msra.mxu1 %v869_v20 }
 0x3c0   :  { %v421_v29 = vmul.f32 %v930_v28, %v753_v0  ;;  %874 = vmatprep.subr.bf16.mxu1 %v873_v25 }
 0x3c1   :  { %v546_v51 = vpop.permute.xlu1 %545 }
 0x3c2   :  { %793 = vmatmul.mubr.msk.f32.gmra.mrb[10].mxu1 %vm32_vm0, %v421_v29 }
 0x3c3   :  { %876 = vmatpush3.bf16.msra.mxu1 %v873_v25 }
 0x3c4   :  { %878 = vmatprep.subr.bf16.mxu1 %v877_v30 }
 0x3c5   :  { %v551_v60 = vpop.permute.xlu1 %550 }
 0x3c7   :  { %880 = vmatpush3.bf16.msra.mxu1 %v877_v30 }
 0x3c8   :  { %882 = vmatprep.subr.bf16.mxu1 %v881_v33 }
 0x3cb   :  { %884 = vmatpush3.bf16.msra.mxu1 %v881_v33 }
 0x3cc   :  { %886 = vmatprep.subr.bf16.mxu1 %v885_v36 }
 0x3cf   :  { %888 = vmatpush3.bf16.msra.mxu1 %v885_v36 }
 0x3d0   :  { %890 = vmatprep.subr.bf16.mxu1 %v889_v39 }
 0x3d3   :  { %892 = vmatpush3.bf16.msra.mxu1 %v889_v39 }
 0x3d4   :  { %894 = vmatprep.subr.bf16.mxu1 %v893_v42 }
 0x3d7   :  { %896 = vmatpush3.bf16.msra.mxu1 %v893_v42 }
 0x48d   :  { %v791_v46 = vpop.f32.mrb[8].mxu1 }
 0x48e   :  { %v530_v47 = vsub.f32 %v791_v46, %v703_v45  ;;  %v501_v48 = vpop.f32.mrb[9].mxu1 }
 0x48f   :  { %v529_v49 = vsub.f32 %v501_v48, %v703_v45 }
 0x490   :  { %v554_v50 = vmul.f32 %v541_v44, %v530_v47 }
 0x491   :  { %v553_v52 = vmul.f32 %v536_v43, %v529_v49 }
 0x492   :  { %v558_v53 = vadd.f32 %v703_v45, %v554_v50 }
 0x493   :  { %v557_v54 = vadd.f32 %v703_v45, %v553_v52 }
 0x494   :  { %v562_v57 = vmax.f32 %v558_v53, 0.0 }
 0x495   :  { %v794_v55 = vpop.f32.mrb[10].mxu1  ;;  %v561_v56 = vmax.f32 %v557_v54, 0.0 }
 0x496   :  { %v532_v58 = vsub.f32 %v794_v55, %v703_v45  ;;  %v511_v59 = vpop.f32.mrb[11].mxu1 }
 0x497   :  { %v531_v61 = vsub.f32 %v511_v59, %v703_v45  ;;  %827 = vmatprep.mubr.f32.mxu1 %v561_v56 }
 0x498   :  { %v556_v62 = vmul.f32 %v551_v60, %v532_v58  ;;  %828 = vmatmul.mubr.f32.vlgmr.msra.gmra.mrb[12].mxu1 %v562_v57 }
 0x499   :  { %v555_v63 = vmul.f32 %v546_v51, %v531_v61 }
 0x49a   :  { %v560_v0 = vadd.f32 %v703_v45, %v556_v62 }
 0x49b   :  { %v559_v1 = vadd.f32 %v703_v45, %v555_v63 }
 0x49c   :  { %v564_v3 = vmax.f32 %v560_v0, 0.0 }
 0x49d   :  { %v563_v2 = vmax.f32 %v559_v1, 0.0 }
 0x49f   :  { %830 = vmatprep.mubr.f32.mxu1 %v563_v2 }
 0x4a0   :  { %831 = vmatmul.mubr.f32.gmra.mrb[14].mxu1 %v564_v3 }
 0x56b   :  { %v829_v5 = vpop.f32.mrb[12].mxu1 }
 0x56c   :  { %v658_v6 = vadd.f32 %v829_v5, %v704_v4  ;;  %v652_v7 = vpop.f32.mrb[13].mxu1 }
 0x56d   :  { %v653_v8 = vadd.f32 %v704_v4, %v652_v7 }
 0x56e   :  { %672 = vst [vmem:[#allocation2 + $0x8] sm:$0xff] %v658_v6 }
 0x56f   :  { %671 = vst [vmem:[#allocation2] sm:$0xff] %v653_v8 }
 0x573   :  { %v832_v9 = vpop.f32.mrb[14].mxu1 }
 0x574   :  { %v668_v10 = vadd.f32 %v832_v9, %v704_v4  ;;  %v662_v11 = vpop.f32.mrb[15].mxu1 }
 0x575   :  { %v663_v12 = vadd.f32 %v704_v4, %v662_v11 }
 0x576   :  { %674 = vst [vmem:[#allocation2 + $0x18] sm:$0xff] %v668_v10 }
 0x577   :  { %673 = vst [vmem:[#allocation2 + $0x10] sm:$0xff] %v663_v12 }
 0x578   :  { %942 = shalt.err (!%p939_p4)
}
 0x579   :  { %s943_s8 = scalar_lea.hbm %s1266_s7, 512 }
 0x57a   :  { %p944_p5 = scmp.ne.s32.totalorder %s1266_s7, %s943_s8  ;;  %p947_p6 = scmp.lt.u32.totalorder %s943_s8, %s1266_s7 }
 0x57c   :  { %p949_p7 = pnand %p947_p6, %p944_p5 }
 0x57e   :  { %952 = shalt.err (!%p949_p7)
}
 0x57f   :  { %s959_s12 = smov 128   ;;  %s960_s13 = smov 8  }
 0x580   :  { %686 = dma.vmem_to_hbm [thread:$0]  %s681_s4, 512, %s1266_s7, [#allocation3], %s959_s12, %s959_s12, %s960_s13  }
 0x581   :  { %953 = dma.done.wait [#allocation3], 512  }
 0x582   :  { %954 = vsyncadd [#allocation3], 4294966784 }
 0x583   :  { %690 = vsyncpa [#allocation3], 1 }

</bundles_post_ra>
